<compile_context>
chip_gen: v7x
topology: tpu7x:2x2x1
jax: 0.10.0
libtpu: 0.0.40
codegen_flags: <defaults>
</compile_context>

<pallas_src>
import functools
import math

import jax
import jax.numpy as jnp
from jax.experimental import pallas as pl
from jax.experimental.pallas import tpu as pltpu

_MASK_VALUE = -1e30  # finite "-inf": avoids inf-inf=NaN and l==0 divides


def sdpa_flash_kernel(q_ref, k_ref, v_ref, mask_ref, o_ref,
                      m_scr, l_scr, acc_scr, *, scale):
    # q_ref   : (bb, bq, d_k)     k_ref/v_ref : (bb, bk, d_k)/(bb, bk, d_v)
    # mask_ref: (bb, bq, bk) int8, nonzero == masked
    # o_ref   : (bb, bq, d_v)     scratch: m/l (bb, bq, 1), acc (bb, bq, d_v)
    ki = pl.program_id(2)

    @pl.when(ki == 0)
    def _init():
        m_scr[...] = jnp.full_like(m_scr, -jnp.inf)
        l_scr[...] = jnp.zeros_like(l_scr)
        acc_scr[...] = jnp.zeros_like(acc_scr)

    # Fold 1/sqrt(d_k) into q (touches Lq*d_k elems, not Lq*Lk scores), then
    # feed the MXU bf16 operands with f32 accumulation.
    q = (q_ref[...].astype(jnp.float32) * scale).astype(jnp.bfloat16)
    k = k_ref[...].astype(jnp.bfloat16)
    s = jnp.einsum("bqd,bkd->bqk", q, k, preferred_element_type=jnp.float32)

    # masked_fill_(attn_mask, -inf)  (large finite fill, see _MASK_VALUE)
    s = jnp.where(mask_ref[...] != 0, _MASK_VALUE, s)

    # Online-softmax (flash) recurrence; normalization deferred to the end.
    m_prev = m_scr[...]
    m_new = jnp.maximum(m_prev, jnp.max(s, axis=-1, keepdims=True))
    alpha = jnp.exp(m_prev - m_new)
    p = jnp.exp(s - m_new)

    l_scr[...] = alpha * l_scr[...] + jnp.sum(p, axis=-1, keepdims=True)
    acc_scr[...] = alpha * acc_scr[...] + jnp.einsum(
        "bqk,bkd->bqd",
        p.astype(jnp.bfloat16), v_ref[...].astype(jnp.bfloat16),
        preferred_element_type=jnp.float32)
    m_scr[...] = m_new

    # TODO(synk): nn.Dropout applied as identity (inference mode); training
    # dropout would use pltpu.prng_seed/prng_random_bits on p here.

    @pl.when(ki == pl.num_programs(2) - 1)
    def _finalize():
        inv_l = pl.reciprocal(l_scr[...], approx=True)  # EUP slot, ~free
        o_ref[...] = (acc_scr[...] * inv_l).astype(o_ref.dtype)


def _pick_tile(extent, preferred):
    """Largest preferred tile that divides `extent`, else the full extent
    (full extent is always legal under the (8,128) BlockSpec rule)."""
    for t in preferred:
        if t <= extent and extent % t == 0:
            return t
    return extent


def scaled_dot_product_attention(q, k, v, attn_mask, *,
                                 block_b=8, block_q=None, block_k=None):
    """q: (B, Lq, d_k), k: (B, Lk, d_k), v: (B, Lk, d_v),
    attn_mask: (B, Lq, Lk) bool (True == masked). Returns (B, Lq, d_v) f32."""
    B, Lq, d_k = q.shape
    _, Lk, d_v = v.shape
    assert k.shape == (B, Lk, d_k)
    assert attn_mask.shape == (B, Lq, Lk)

    bb = math.gcd(B, max(1, block_b))                       # divides B
    bq = block_q if block_q is not None else _pick_tile(Lq, (256, 128))
    bk = block_k if block_k is not None else _pick_tile(Lk, (512, 256, 128))
    assert B % bb == 0 and Lq % bq == 0 and Lk % bk == 0

    scale = 1.0 / float(d_k) ** 0.5
    # int8 mask: the only O(Lq*Lk) HBM operand -> 4x less DMA than int32.
    mask_i8 = attn_mask.astype(jnp.int8)

    kernel = functools.partial(sdpa_flash_kernel, scale=scale)

    return pl.pallas_call(
        kernel,
        out_shape=jax.ShapeDtypeStruct((B, Lq, d_v), jnp.float32),
        grid_spec=pltpu.PrefetchScalarGridSpec(
            num_scalar_prefetch=0,
            grid=(B // bb, Lq // bq, Lk // bk),
            in_specs=[
                pl.BlockSpec((bb, bq, d_k), lambda b, qi, ki: (b, qi, 0)),
                pl.BlockSpec((bb, bk, d_k), lambda b, qi, ki: (b, ki, 0)),
                pl.BlockSpec((bb, bk, d_v), lambda b, qi, ki: (b, ki, 0)),
                pl.BlockSpec((bb, bq, bk), lambda b, qi, ki: (b, qi, ki)),
            ],
            out_specs=pl.BlockSpec((bb, bq, d_v), lambda b, qi, ki: (b, qi, 0)),
            scratch_shapes=[
                pltpu.VMEM((bb, bq, 1), jnp.float32),    # running max   m
                pltpu.VMEM((bb, bq, 1), jnp.float32),    # running denom l
                pltpu.VMEM((bb, bq, d_v), jnp.float32),  # unnormalized acc
            ],
        ),
        compiler_params=pltpu.CompilerParams(
            dimension_semantics=("parallel", "parallel", "arbitrary")),
    )(q, k, v, mask_i8)


def reference_sdpa(q, k, v, attn_mask):
    """Pure-JAX reference of the PyTorch forward (dropout = identity)."""
    d_k = q.shape[-1]
    s = jnp.einsum("bqd,bkd->bqk", q, k) / (float(d_k) ** 0.5)
    s = jnp.where(attn_mask, -jnp.inf, s)
    p = jax.nn.softmax(s, axis=-1)
    return jnp.einsum("bqk,bkd->bqd", p, v)


if __name__ == "__main__":
    B, Lq, Lk, d_k, d_v = 2, 8, 8, 32, 32
    key = jax.random.PRNGKey(0)
    kq, kk_, kv = jax.random.split(key, 3)
    q = jax.random.normal(kq, (B, Lq, d_k), jnp.float32)
    k = jax.random.normal(kk_, (B, Lk, d_k), jnp.float32)
    v = jax.random.normal(kv, (B, Lk, d_v), jnp.float32)
    # Causal mask (True == masked); every row keeps at least one valid key.
    causal = jnp.triu(jnp.ones((Lq, Lk), dtype=bool), k=1)
    attn_mask = jnp.broadcast_to(causal, (B, Lq, Lk))

    out = scaled_dot_product_attention(q, k, v, attn_mask)
    jax.block_until_ready(out)

    ref = reference_sdpa(q, k, v, attn_mask)
    assert out.shape == (B, Lq, d_v)
    err = float(jnp.max(jnp.abs(out - ref)))
    # bf16 MXU operands + approx reciprocal -> relaxed tolerance vs f32 ref.
    assert jnp.allclose(out, ref, atol=2e-2, rtol=2e-2), err
    print("KERNEL_OK")
</pallas_src>

<mosaic_0001>
module attributes {stable_mosaic.version = 11 : i64} {
  func.func @sdpa_flash_kernel(%arg0: i32, %arg1: i32, %arg2: i32, %arg3: memref<2x8x32xf32, #tpu.memory_space<vmem>>, %arg4: memref<2x8x32xf32, #tpu.memory_space<vmem>>, %arg5: memref<2x8x32xf32, #tpu.memory_space<vmem>>, %arg6: memref<2x8x8xi8, #tpu.memory_space<vmem>>, %arg7: memref<2x8x32xf32, #tpu.memory_space<vmem>>, %arg8: memref<2x8x1xf32, #tpu.memory_space<vmem>>, %arg9: memref<2x8x1xf32, #tpu.memory_space<vmem>>, %arg10: memref<2x8x32xf32, #tpu.memory_space<vmem>>) attributes {dimension_semantics = [#tpu.dimension_semantics<parallel>, #tpu.dimension_semantics<parallel>, #tpu.dimension_semantics<arbitrary>], iteration_bounds = array<i64: 1, 1, 1>, scalar_prefetch = 0 : i64, scratch_operands = 3 : i64, tpu.core_type = #tpu.core_type<tc>, window_params = [{transform_indices = @transform_0, window_bounds = array<i64: 2, 8, 32>}, {transform_indices = @transform_1, window_bounds = array<i64: 2, 8, 32>}, {transform_indices = @transform_2, window_bounds = array<i64: 2, 8, 32>}, {transform_indices = @transform_3, window_bounds = array<i64: 2, 8, 8>}, {transform_indices = @transform_4, window_bounds = array<i64: 2, 8, 32>}]} {
    %c0_i32 = arith.constant 0 : i32
    %0 = arith.cmpi eq, %arg2, %c0_i32 : i32
    %1 = arith.extui %0 : i1 to i32
    %c0_i32_0 = arith.constant 0 : i32
    %2 = arith.cmpi ne, %1, %c0_i32_0 : i32
    scf.if %2 {
      %cst_37 = arith.constant 0xFF800000 : f32
      %43 = vector.broadcast %cst_37 : f32 to vector<2x8x1xf32>
      %c0_38 = arith.constant 0 : index
      %c0_39 = arith.constant 0 : index
      %c0_40 = arith.constant 0 : index
      %44 = vector.load %arg8[%c0_38, %c0_39, %c0_40] : memref<2x8x1xf32, #tpu.memory_space<vmem>>, vector<2x8x1xf32>
      tpu.vector_store %arg8[%c0_38, %c0_39, %c0_40], %43 {strides = array<i32>} : memref<2x8x1xf32, #tpu.memory_space<vmem>>, vector<2x8x1xf32>,
      %cst_41 = arith.constant 0.000000e+00 : f32
      %45 = vector.broadcast %cst_41 : f32 to vector<2x8x1xf32>
      %c0_42 = arith.constant 0 : index
      %c0_43 = arith.constant 0 : index
      %c0_44 = arith.constant 0 : index
      %46 = vector.load %arg9[%c0_42, %c0_43, %c0_44] : memref<2x8x1xf32, #tpu.memory_space<vmem>>, vector<2x8x1xf32>
      tpu.vector_store %arg9[%c0_42, %c0_43, %c0_44], %45 {strides = array<i32>} : memref<2x8x1xf32, #tpu.memory_space<vmem>>, vector<2x8x1xf32>,
      %cst_45 = arith.constant 0.000000e+00 : f32
      %47 = vector.broadcast %cst_45 : f32 to vector<2x8x32xf32>
      %c0_46 = arith.constant 0 : index
      %c0_47 = arith.constant 0 : index
      %c0_48 = arith.constant 0 : index
      %48 = vector.load %arg10[%c0_46, %c0_47, %c0_48] : memref<2x8x32xf32, #tpu.memory_space<vmem>>, vector<2x8x32xf32>
      tpu.vector_store %arg10[%c0_46, %c0_47, %c0_48], %47 {strides = array<i32>} : memref<2x8x32xf32, #tpu.memory_space<vmem>>, vector<2x8x32xf32>,
    } else {
    }
    %c0 = arith.constant 0 : index
    %c0_1 = arith.constant 0 : index
    %c0_2 = arith.constant 0 : index
    %3 = vector.load %arg3[%c0, %c0_1, %c0_2] : memref<2x8x32xf32, #tpu.memory_space<vmem>>, vector<2x8x32xf32>
    %cst = arith.constant 0.176776692 : f32
    %4 = vector.broadcast %cst : f32 to vector<2x8x32xf32>
    %5 = arith.mulf %3, %4 : vector<2x8x32xf32>
    %6 = arith.truncf %5 : vector<2x8x32xf32> to vector<2x8x32xbf16>
    %c0_3 = arith.constant 0 : index
    %c0_4 = arith.constant 0 : index
    %c0_5 = arith.constant 0 : index
    %7 = vector.load %arg4[%c0_3, %c0_4, %c0_5] : memref<2x8x32xf32, #tpu.memory_space<vmem>>, vector<2x8x32xf32>
    %8 = arith.truncf %7 : vector<2x8x32xf32> to vector<2x8x32xbf16>
    "tpu.trace_start"() <{level = 10 : i32, message = "bqd,bkd->bqk"}> : () -> ()
    %cst_6 = arith.constant dense<0.000000e+00> : vector<2x8x8xf32>
    %9 = tpu.matmul %6, %8, %cst_6 {dimension_numbers = #tpu.dot_dimension_numbers<[2], [2], [1], [1], [0, 0, 0, 1, 1, 1], [0], [0]>} : vector<2x8x32xbf16>, vector<2x8x32xbf16>, vector<2x8x8xf32> -> vector<2x8x8xf32>
    "tpu.trace_stop"() : () -> ()
    %c0_7 = arith.constant 0 : index
    %c0_8 = arith.constant 0 : index
    %c0_9 = arith.constant 0 : index
    %10 = vector.load %arg6[%c0_7, %c0_8, %c0_9] : memref<2x8x8xi8, #tpu.memory_space<vmem>>, vector<2x8x8xi8>
    %c0_i8 = arith.constant 0 : i8
    %11 = vector.broadcast %c0_i8 : i8 to vector<2x8x8xi8>
    %12 = arith.cmpi ne, %10, %11 : vector<2x8x8xi8>
    %cst_10 = arith.constant -1.000000e+30 : f32
    %13 = vector.broadcast %cst_10 : f32 to vector<2x8x8xf32>
    %14 = arith.select %12, %13, %9 : vector<2x8x8xi1>, vector<2x8x8xf32>
    %c0_11 = arith.constant 0 : index
    %c0_12 = arith.constant 0 : index
    %c0_13 = arith.constant 0 : index
    %15 = vector.load %arg8[%c0_11, %c0_12, %c0_13] : memref<2x8x1xf32, #tpu.memory_space<vmem>>, vector<2x8x1xf32>
    %cst_14 = arith.constant dense<0xFF800000> : vector<2x8xf32>
    %16 = vector.multi_reduction <maximumf>, %14, %cst_14 [2] : vector<2x8x8xf32> to vector<2x8xf32>
    %17 = vector.shape_cast %16 : vector<2x8xf32> to vector<2x8x1xf32>
    %18 = arith.maximumf %15, %17 : vector<2x8x1xf32>
    %19 = arith.subf %15, %18 : vector<2x8x1xf32>
    %20 = math.exp %19 : vector<2x8x1xf32>
    %21 = vector.broadcast %18 : vector<2x8x1xf32> to vector<2x8x8xf32>
    %22 = arith.subf %14, %21 : vector<2x8x8xf32>
    %23 = math.exp %22 : vector<2x8x8xf32>
    %c0_15 = arith.constant 0 : index
    %c0_16 = arith.constant 0 : index
    %c0_17 = arith.constant 0 : index
    %24 = vector.load %arg9[%c0_15, %c0_16, %c0_17] : memref<2x8x1xf32, #tpu.memory_space<vmem>>, vector<2x8x1xf32>
    %25 = arith.mulf %20, %24 : vector<2x8x1xf32>
    %cst_18 = arith.constant dense<0.000000e+00> : vector<2x8xf32>
    %26 = vector.multi_reduction <add>, %23, %cst_18 [2] : vector<2x8x8xf32> to vector<2x8xf32>
    %27 = vector.shape_cast %26 : vector<2x8xf32> to vector<2x8x1xf32>
    %28 = arith.addf %25, %27 : vector<2x8x1xf32>
    %c0_19 = arith.constant 0 : index
    %c0_20 = arith.constant 0 : index
    %c0_21 = arith.constant 0 : index
    %29 = vector.load %arg9[%c0_19, %c0_20, %c0_21] : memref<2x8x1xf32, #tpu.memory_space<vmem>>, vector<2x8x1xf32>
    tpu.vector_store %arg9[%c0_19, %c0_20, %c0_21], %28 {strides = array<i32>} : memref<2x8x1xf32, #tpu.memory_space<vmem>>, vector<2x8x1xf32>,
    %c0_22 = arith.constant 0 : index
    %c0_23 = arith.constant 0 : index
    %c0_24 = arith.constant 0 : index
    %30 = vector.load %arg10[%c0_22, %c0_23, %c0_24] : memref<2x8x32xf32, #tpu.memory_space<vmem>>, vector<2x8x32xf32>
    %31 = vector.broadcast %20 : vector<2x8x1xf32> to vector<2x8x32xf32>
    %32 = arith.mulf %31, %30 : vector<2x8x32xf32>
    %33 = arith.truncf %23 : vector<2x8x8xf32> to vector<2x8x8xbf16>
    %c0_25 = arith.constant 0 : index
    %c0_26 = arith.constant 0 : index
    %c0_27 = arith.constant 0 : index
    %34 = vector.load %arg5[%c0_25, %c0_26, %c0_27] : memref<2x8x32xf32, #tpu.memory_space<vmem>>, vector<2x8x32xf32>
    %35 = arith.truncf %34 : vector<2x8x32xf32> to vector<2x8x32xbf16>
    "tpu.trace_start"() <{level = 10 : i32, message = "bqk,bkd->bqd"}> : () -> ()
    %cst_28 = arith.constant dense<0.000000e+00> : vector<2x8x32xf32>
    %36 = tpu.matmul %33, %35, %cst_28 {dimension_numbers = #tpu.dot_dimension_numbers<[2], [1], [1], [2], [0, 0, 0, 1, 1, 2], [0], [0]>} : vector<2x8x8xbf16>, vector<2x8x32xbf16>, vector<2x8x32xf32> -> vector<2x8x32xf32>
    "tpu.trace_stop"() : () -> ()
    %37 = arith.addf %32, %36 : vector<2x8x32xf32>
    %c0_29 = arith.constant 0 : index
    %c0_30 = arith.constant 0 : index
    %c0_31 = arith.constant 0 : index
    %38 = vector.load %arg10[%c0_29, %c0_30, %c0_31] : memref<2x8x32xf32, #tpu.memory_space<vmem>>, vector<2x8x32xf32>
    tpu.vector_store %arg10[%c0_29, %c0_30, %c0_31], %37 {strides = array<i32>} : memref<2x8x32xf32, #tpu.memory_space<vmem>>, vector<2x8x32xf32>,
    %c0_32 = arith.constant 0 : index
    %c0_33 = arith.constant 0 : index
    %c0_34 = arith.constant 0 : index
    %39 = vector.load %arg8[%c0_32, %c0_33, %c0_34] : memref<2x8x1xf32, #tpu.memory_space<vmem>>, vector<2x8x1xf32>
    tpu.vector_store %arg8[%c0_32, %c0_33, %c0_34], %18 {strides = array<i32>} : memref<2x8x1xf32, #tpu.memory_space<vmem>>, vector<2x8x1xf32>,
    %c0_i32_35 = arith.constant 0 : i32
    %40 = arith.cmpi eq, %arg2, %c0_i32_35 : i32
    %41 = arith.extui %40 : i1 to i32
    %c0_i32_36 = arith.constant 0 : i32
    %42 = arith.cmpi ne, %41, %c0_i32_36 : i32
    scf.if %42 {
      %c0_37 = arith.constant 0 : index
      %c0_38 = arith.constant 0 : index
      %c0_39 = arith.constant 0 : index
      %43 = vector.load %arg9[%c0_37, %c0_38, %c0_39] : memref<2x8x1xf32, #tpu.memory_space<vmem>>, vector<2x8x1xf32>
      %44 = tpu.reciprocal %43 {approx = true} : vector<2x8x1xf32> -> vector<2x8x1xf32>
      %c0_40 = arith.constant 0 : index
      %c0_41 = arith.constant 0 : index
      %c0_42 = arith.constant 0 : index
      %45 = vector.load %arg10[%c0_40, %c0_41, %c0_42] : memref<2x8x32xf32, #tpu.memory_space<vmem>>, vector<2x8x32xf32>
      %46 = vector.broadcast %44 : vector<2x8x1xf32> to vector<2x8x32xf32>
      %47 = arith.mulf %45, %46 : vector<2x8x32xf32>
      %c0_43 = arith.constant 0 : index
      %c0_44 = arith.constant 0 : index
      %c0_45 = arith.constant 0 : index
      %48 = vector.load %arg7[%c0_43, %c0_44, %c0_45] : memref<2x8x32xf32, #tpu.memory_space<vmem>>, vector<2x8x32xf32>
      tpu.vector_store %arg7[%c0_43, %c0_44, %c0_45], %47 {strides = array<i32>} : memref<2x8x32xf32, #tpu.memory_space<vmem>>, vector<2x8x32xf32>,
    } else {
    }
    return
  }
  func.func @transform_0(%arg0: i32, %arg1: i32, %arg2: i32) -> (i32, i32, i32) {
    %c0_i32 = arith.constant 0 : i32
    %c0_i32_0 = arith.constant 0 : i32
    return %arg0, %arg1, %c0_i32 : i32, i32, i32
  }
  func.func @transform_1(%arg0: i32, %arg1: i32, %arg2: i32) -> (i32, i32, i32) {
    %c0_i32 = arith.constant 0 : i32
    %c0_i32_0 = arith.constant 0 : i32
    return %arg0, %arg2, %c0_i32 : i32, i32, i32
  }
  func.func @transform_2(%arg0: i32, %arg1: i32, %arg2: i32) -> (i32, i32, i32) {
    %c0_i32 = arith.constant 0 : i32
    %c0_i32_0 = arith.constant 0 : i32
    return %arg0, %arg2, %c0_i32 : i32, i32, i32
  }
  func.func @transform_3(%arg0: i32, %arg1: i32, %arg2: i32) -> (i32, i32, i32) {
    %c0_i32 = arith.constant 0 : i32
    return %arg0, %arg1, %arg2 : i32, i32, i32
  }
  func.func @transform_4(%arg0: i32, %arg1: i32, %arg2: i32) -> (i32, i32, i32) {
    %c0_i32 = arith.constant 0 : i32
    %c0_i32_0 = arith.constant 0 : i32
    return %arg0, %arg1, %c0_i32 : i32, i32, i32
  }
}

</mosaic_0001>

<bundles_post_ra>
// kernel: tpu_custom_call.1
= control target key start
LH: loop header
LB: loop body
LE: loop exit
PB: predicated region body
PF: predicated region fallthrough
CT: control target
= control target key end

     0   :  { %9 = vsyncpa [#allocation6], 0  ;;  %s687_s0 = inlined_call_operand.hbm [shape: f32[2,8,32], index: 0, kind: input, shape index: {}]   ;;  %s688_s1 = inlined_call_operand.hbm [shape: f32[2,8,32], index: 1, kind: input, shape index: {}]   ;;  %s689_s2 = inlined_call_operand.hbm [shape: f32[2,8,32], index: 2, kind: input, shape index: {}]   ;;  %s690_s3 = inlined_call_operand.vmem [shape: s8[2,8,8], index: 3, kind: input, shape index: {}]   ;;  %s691_s4 = inlined_call_operand.hbm [shape: f32[2,8,32], index: 4, kind: output, shape index: {}]  }
   0x1   :  { %10 = vsyncpa [#allocation9], 0 }
   0x2   :  { %11 = vsyncpa [#allocation7], 0  ;;  %s551_s15 = smov [#allocation8]   ;;  %s552_s17 = smov [#allocation5]  }
   0x3   :  { %s29_s16 = sshll.u32 %s551_s15, 4  ;;  %s17_s18 = sshll.u32 %s552_s17, 4  ;;  %s30_s16 = int_to_ptr.vmem [resolvable:$true] %s29_s16  ;;  %s586_s18 = int_to_ptr.vmem [resolvable:$true] %s17_s18 }
   0x4   :  { %s457_s21 = scalar_lea.hbm %s688_s1, 256 }
   0x5   :  { %p458_p0 = scmp.ne.s32.totalorder %s688_s1, %s457_s21  ;;  %p461_p1 = scmp.lt.u32.totalorder %s457_s21, %s688_s1 }
   0x7   :  { %p463_p2 = pnand %p461_p1, %p458_p0 }
   0x9   :  { %466 = shalt.err (!%p463_p2)
}
   0xa   :  { %s467_s26 = scalar_lea.vmem %s30_s16, 256  ;;  %p472_p4 = scmp.lt.s32.totalorder %s30_s16, %s30_s16 }
   0xb   :  { %p468_p3 = scmp.ne.s32.totalorder %s30_s16, %s467_s26  ;;  %p473_p5 = scmp.lt.s32.totalorder %s467_s26, %s467_s26 }
   0xd   :  { %p474_p6 = por %p473_p5, %p472_p4 }
   0xf   :  { %p475_p7 = pnand %p474_p6, %p468_p3 }
  0x11   :  { %478 = shalt.err (!%p475_p7)
}
  0x12   :  { %s553_s27 = smov 128   ;;  %s554_s28 = smov 8  }
  0x13   :  { %35 = dma.hbm_to_vmem [thread:$0]  %s688_s1, 256, %s30_s16, [#allocation9], %s553_s27, %s553_s27, %s554_s28  }
  0x14   :  { %s479_s7 = scalar_lea.hbm %s687_s0, 256 }
  0x15   :  { %p480_p8 = scmp.ne.s32.totalorder %s687_s0, %s479_s7  ;;  %p483_p9 = scmp.lt.u32.totalorder %s479_s7, %s687_s0 }
  0x17   :  { %p485_p10 = pnand %p483_p9, %p480_p8 }
  0x19   :  { %488 = shalt.err (!%p485_p10)
}
  0x1a   :  { %s489_s12 = scalar_lea.vmem %s586_s18, 256  ;;  %p494_p12 = scmp.lt.s32.totalorder %s586_s18, %s586_s18 }
  0x1b   :  { %p490_p11 = scmp.ne.s32.totalorder %s586_s18, %s489_s12  ;;  %p495_p13 = scmp.lt.s32.totalorder %s489_s12, %s489_s12 }
  0x1d   :  { %p496_p0 = por %p495_p13, %p494_p12 }
  0x1f   :  { %p497_p1 = pnand %p496_p0, %p490_p11 }
  0x21   :  { %500 = shalt.err (!%p497_p1)
}
  0x22   :  { %23 = dma.hbm_to_vmem [thread:$0]  %s687_s0, 256, %s586_s18, [#allocation6], %s553_s27, %s553_s27, %s554_s28  }
  0x23   :  { %s555_s14 = smov [#allocation10]   ;;  %s501_s19 = scalar_lea.hbm %s689_s2, 256 }
  0x24   :  { %s41_s15 = sshll.u32 %s555_s14, 4  ;;  %p502_p2 = scmp.ne.s32.totalorder %s689_s2, %s501_s19  ;;  %s42_s15 = int_to_ptr.vmem [resolvable:$true] %s41_s15 }
  0x25   :  { %p505_p3 = scmp.lt.u32.totalorder %s501_s19, %s689_s2 }
  0x27   :  { %p507_p4 = pnand %p505_p3, %p502_p2 }
  0x29   :  { %510 = shalt.err (!%p507_p4)
}
  0x2a   :  { %s511_s24 = scalar_lea.vmem %s42_s15, 256  ;;  %p516_p6 = scmp.lt.s32.totalorder %s42_s15, %s42_s15 }
  0x2b   :  { %p512_p5 = scmp.ne.s32.totalorder %s42_s15, %s511_s24  ;;  %p517_p7 = scmp.lt.s32.totalorder %s511_s24, %s511_s24 }
  0x2d   :  { %p518_p8 = por %p517_p7, %p516_p6 }
  0x2f   :  { %p519_p9 = pnand %p518_p8, %p512_p5 }
  0x31   :  { %522 = shalt.err (!%p519_p9)
}
  0x32   :  { %47 = dma.hbm_to_vmem [thread:$0]  %s689_s2, 256, %s42_s15, [#allocation9], %s553_s27, %s553_s27, %s554_s28  }
  0x33   :  { %545 = dma.done.wait [#allocation6], 256  }
  0x34   :  { %546 = vsyncadd [#allocation6], 4294967040 }
  0x35   :  { %547 = dma.done.wait [#allocation9], 512  }
  0x36   :  { %548 = vsyncadd [#allocation9], 4294966784  ;;  %vm71_vm0 = vcmask 261120   ;;  %v556_v0 = vmov 0.0   ;;  %vm557_vm1 = vmmov 0   ;;  %v80_v1 = vld [vmem:[#allocation8] sm:$0xff] }
  0x37   :  { %409 = vmatprep.subr.bf16.mxu0 %v556_v0  ;;  %72 = vst.msk [vmem:[#allocation4] sm:$0xff] %vm71_vm0, %v556_v0  ;;  %73 = vst.msk [vmem:[#allocation4 + $0x8] sm:$0xff] %vm71_vm0, %v556_v0  ;;  %415 = vmatprep.subr.bf16.mxu1 %v556_v0  ;;  %v81_v2 = vld [vmem:[#allocation8 + $0x8] sm:$0xff]  ;;  %v74_v3 = vld [vmem:[#allocation5] sm:$0xff]  ;;  %v82_v4 = vpack.c.bf16 %v80_v1, %v80_v1  ;;  %v558_v13 = vmov 0   ;;  %vm66_vm2 = vcmask 7168  }
  0x38   :  { %411 = vmatprep.mubr.msk.bf16.mxu0 %vm557_vm1, %v556_v0  ;;  %417 = vmatprep.mubr.msk.bf16.mxu1 %vm557_vm1, %v556_v0  ;;  %v83_v5 = vpack.c.bf16 %v81_v2, %v81_v2  ;;  %v75_v6 = vld [vmem:[#allocation5 + $0x8] sm:$0xff]  ;;  %v76_v9 = vmul.f32 0.17677669, %v74_v3  ;;  %v559_v14 = vmov -inf   ;;  %69 = vst.msk [vmem:[#allocation3] sm:$0xff] %vm66_vm2, %v556_v0  ;;  %70 = vst.msk [vmem:[#allocation3 + $0x8] sm:$0xff] %vm66_vm2, %v556_v0 }
  0x39   :  { %v89_v7 = vsel %vm71_vm0, %v82_v4, 0  ;;  %v77_v10 = vmul.f32 0.17677669, %v75_v6  ;;  %443 = vset.pattern.permute.xlu1 %v558_v13  ;;  %444 = vset.pattern.permute.xlu0 %v558_v13  ;;  %67 = vst.msk [vmem:[#allocation2] sm:$0xff] %vm66_vm2, %v559_v14  ;;  %68 = vst.msk [vmem:[#allocation2 + $0x8] sm:$0xff] %vm66_vm2, %v559_v14  ;;  %vm191_vm7 = vcmask 64512  }
  0x3a   :  { %v135_v8 = vsel %vm71_vm0, %v83_v5, 0  ;;  %410 = vmatpush3.bf16.xpose.msra.mxu0 %v89_v7  ;;  %v78_v11 = vpack.c.bf16 %v76_v9, %v76_v9  ;;  %v177_v15 = vld [vmem:[%s690_s3] sm:$0x3]  ;;  %v178_v16 = vld [vmem:[%s690_s3 + $0x2] sm:$0x3]  ;;  %v253_v41 = vld [vmem:[#allocation10] sm:$0xff] }
  0x3b   :  { %416 = vmatpush3.bf16.xpose.msra.mxu1 %v135_v8  ;;  %421 = vmatprep.subr.bf16.mxu0 %v556_v0  ;;  %v79_v12 = vpack.c.bf16 %v77_v10, %v77_v10  ;;  %vm179_vm3 = vnez %v177_v15  ;;  %vm180_vm4 = vnez %v178_v16  ;;  %vm260_vm8 = vcmask 1043456   ;;  %v254_v44 = vld [vmem:[#allocation10 + $0x8] sm:$0xff]  ;;  %s560_s3 = smov [#allocation11]  }
  0x3c   :  { %427 = vmatprep.subr.bf16.mxu1 %v556_v0  ;;  %v181_v17 = vsel %vm179_vm3, 16843009, %v558_v13  ;;  %v182_v18 = vsel %vm180_vm4, 16843009, %v558_v13  ;;  %v255_v42 = vpack.c.bf16 %v253_v41, %v253_v41  ;;  %v256_v45 = vpack.c.bf16 %v254_v44, %v254_v44  ;;  %s384_s30 = sshll.u32 %s560_s3, 4  ;;  %s385_s30 = int_to_ptr.vmem [resolvable:$true] %s384_s30 }
  0x3d   :  { %v183_v19 = vunpack.c.0.s8 %v181_v17  ;;  %v184_v20 = vunpack.c.0.s8 %v182_v18  ;;  %s523_s5 = scalar_lea.vmem %s385_s30, 256  ;;  %p528_p11 = scmp.lt.s32.totalorder %s385_s30, %s385_s30 }
  0x3e   :  { %v262_v43 = vsel %vm260_vm8, %v255_v42, 0  ;;  %v308_v46 = vsel %vm260_vm8, %v256_v45, 0  ;;  %v238_v14 = vld [vmem:[#allocation4 + $0x8] sm:$0xff]  ;;  %p524_p10 = scmp.ne.s32.totalorder %s385_s30, %s523_s5  ;;  %p529_p12 = scmp.lt.s32.totalorder %s523_s5, %s523_s5 }
  0x3f   :  { %vm185_vm5 = vcmp.ne.s32.totalorder %v183_v19, 0  ;;  %vm186_vm6 = vcmp.ne.s32.totalorder %v184_v20, 0  ;;  %v222_v63 = vld [vmem:[#allocation3] sm:$0xff]  ;;  %v223_v2 = vld [vmem:[#allocation3 + $0x8] sm:$0xff] }
  0x40   :  { %v189_v33 = vld [vmem:[#allocation2] sm:$0xff]  ;;  %v190_v36 = vld [vmem:[#allocation2 + $0x8] sm:$0xff]  ;;  %p530_p13 = por %p529_p12, %p528_p11 }
  0x41   :  { %412 = vmatmul.mubr.msk.bf16.vlgmr.msra.gmra.mrb[0].mxu0 %vm71_vm0, %v78_v11  ;;  %v237_v11 = vld [vmem:[#allocation4] sm:$0xff] }
  0x42   :  { %418 = vmatmul.mubr.msk.bf16.vlgmr.msra.gmra.mrb[0].mxu1 %vm71_vm0, %v79_v12  ;;  %423 = vmatprep.mubr.msk.bf16.mxu0 %vm557_vm1, %v556_v0  ;;  %p531_p0 = pnand %p530_p13, %p524_p10 }
  0x43   :  { %429 = vmatprep.mubr.msk.bf16.mxu1 %vm557_vm1, %v556_v0  ;;  %422 = vmatpush3.bf16.msra.mxu0 %v262_v43 }
  0x44   :  { %428 = vmatpush3.bf16.msra.mxu1 %v308_v46 }
 0x114   :  { %v125_v21 = vpop.f32.mrb[0].mxu0 }
 0x115   :  { %v171_v22 = vpop.f32.mrb[0].mxu1  ;;  %v187_v23 = vsel %vm185_vm5, -1e+30, %v125_v21  ;;  %v413_v24 = vpop.f32.mrb[1].mxu0 }
 0x116   :  { %v188_v25 = vsel %vm186_vm6, -1e+30, %v171_v22  ;;  %v419_v26 = vpop.f32.mrb[1].mxu1  ;;  %v128_v27 = vpop.f32.mrb[2].mxu0  ;;  %v192_v29 = vsel %vm191_vm7, %v187_v23, -inf }
 0x117   :  { %v174_v28 = vpop.f32.mrb[2].mxu1  ;;  %193 = vmax.xlane.f32.xlu0 %v192_v29  ;;  %v414_v30 = vpop.f32.mrb[3].mxu0  ;;  %v195_v32 = vsel %vm191_vm7, %v188_v25, -inf }
 0x118   :  { %v420_v31 = vpop.f32.mrb[3].mxu1 }
 0x11b   :  { %196 = vmax.xlane.f32.xlu0 %v195_v32 }
 0x1a4   :  { %v194_v34 = vpop.xlane.xlu0 %193 }
 0x1a5   :  { %v198_v35 = vmax.f32 %v189_v33, %v194_v34 }
 0x1a7   :  { %v200_v37 = vsub.f32 %v189_v33, %v198_v35  ;;  %354 = vst.msk [vmem:[#allocation2] sm:$0xff] %vm66_vm2, %v198_v35  ;;  %208 = vperm.xlu1 %443, %v198_v35  }
 0x1a8   :  { %v197_v38 = vpop.xlane.xlu0 %196 }
 0x1a9   :  { %v199_v39 = vmax.f32 %v190_v36, %v197_v38  ;;  %v202_v60 = vmul.f32 1.442695, %v200_v37 }
 0x1ab   :  { %v201_v40 = vsub.f32 %v190_v36, %v199_v39  ;;  %355 = vst.msk [vmem:[#allocation2 + $0x8] sm:$0xff] %vm66_vm2, %v199_v39  ;;  %213 = vperm.xlu1 %443, %v199_v39  }
 0x1ad   :  { %v204_v59 = vmul.f32 1.442695, %v201_v40 }
 0x226   :  { %v209_v47 = vpop.permute.xlu1 %208 }
 0x227   :  { %v216_v48 = vsub.f32 %v187_v23, %v209_v47 }
 0x229   :  { %v218_v49 = vmul.f32 1.442695, %v216_v48 }
 0x22a   :  { %v214_v50 = vpop.permute.xlu1 %213 }
 0x22b   :  { %445 = vpow2.f32 %v218_v49  ;;  %v217_v51 = vsub.f32 %v188_v25, %v214_v50 }
 0x22d   :  { %v220_v52 = vmul.f32 1.442695, %v217_v51 }
 0x22f   :  { %447 = vpow2.f32 %v220_v52 }
 0x230   :  { %449 = vpow2.f32 %v204_v59 }
 0x231   :  { %451 = vpow2.f32 %v202_v60 }
 0x235   :  { %v446_v53 = vpop.eup %445 }
 0x236   :  { %v226_v54 = vsel %vm191_vm7, %v446_v53, 0.0  ;;  %v251_v55 = vpack.c.bf16 %v446_v53, %v446_v53 }
 0x237   :  { %227 = vadd.xlane.f32.xlu0 %v226_v54 }
 0x238   :  { %424 = vmatmul.mubr.msk.bf16.vlgmr.msra.gmra.mrb[4].mxu0 %vm191_vm7, %v251_v55 }
 0x239   :  { %v448_v56 = vpop.eup %447 }
 0x23a   :  { %v229_v57 = vsel %vm191_vm7, %v448_v56, 0.0  ;;  %v252_v58 = vpack.c.bf16 %v448_v56, %v448_v56  ;;  %v450_v61 = vpop.eup %449 }
 0x23b   :  { %230 = vadd.xlane.f32.xlu1 %v229_v57  ;;  %v452_v62 = vpop.eup %451  ;;  %v225_v4 = vmul.f32 %v450_v61, %v223_v2 }
 0x23c   :  { %430 = vmatmul.mubr.msk.bf16.vlgmr.msra.gmra.mrb[4].mxu1 %vm191_vm7, %v252_v58  ;;  %v224_v0 = vmul.f32 %v452_v62, %v222_v63 }
 0x24c   :  { %246 = vperm.xlu1 %443, %v450_v61  }
 0x24d   :  { %241 = vperm.xlu0 %444, %v452_v62  }
 0x2c4   :  { %v228_v1 = vpop.xlane.xlu0 %227 }
 0x2c5   :  { %v232_v3 = vadd.f32 %v228_v1, %v224_v0 }
 0x2c7   :  { %235 = vst.msk [vmem:[#allocation3] sm:$0xff] %vm66_vm2, %v232_v3 }
 0x2c8   :  { %v231_v5 = vpop.xlane.xlu1 %230 }
 0x2c9   :  { %v233_v6 = vadd.f32 %v231_v5, %v225_v4 }
 0x2cb   :  { %236 = vst.msk [vmem:[#allocation3 + $0x8] sm:$0xff] %vm66_vm2, %v233_v6 }
 0x2cc   :  { %v242_v12 = vpop.permute.xlu0 %241  ;;  %v247_v15 = vpop.permute.xlu1 %246 }
 0x2cd   :  { %v249_v13 = vmul.f32 %v242_v12, %v237_v11  ;;  %v250_v20 = vmul.f32 %v247_v15, %v238_v14 }
 0x2ce   :  { %v359_v7 = vld [vmem:[#allocation3] sm:$0xff] }
 0x2cf   :  { %453 = vrcp.f32 %v359_v7 }
 0x2d2   :  { %v360_v8 = vld [vmem:[#allocation3 + $0x8] sm:$0xff] }
 0x2d3   :  { %455 = vrcp.f32 %v360_v8 }
 0x2d9   :  { %v454_v9 = vpop.eup %453 }
 0x2da   :  { %367 = vperm.xlu0 %444, %v454_v9  }
 0x2dd   :  { %v456_v10 = vpop.eup %455 }
 0x2de   :  { %372 = vperm.xlu0 %444, %v456_v10  }
 0x30b   :  { %v298_v16 = vpop.f32.mrb[4].mxu0 }
 0x30c   :  { %v350_v17 = vadd.f32 %v298_v16, %v249_v13  ;;  %v425_v18 = vpop.f32.mrb[5].mxu0 }
 0x30d   :  { %v301_v19 = vpop.f32.mrb[6].mxu0 }
 0x30e   :  { %352 = vst.msk [vmem:[#allocation4] sm:$0xff] %vm71_vm0, %v350_v17  ;;  %v426_v21 = vpop.f32.mrb[7].mxu0 }
 0x30f   :  { %v344_v22 = vpop.f32.mrb[4].mxu1 }
 0x310   :  { %v351_v23 = vadd.f32 %v344_v22, %v250_v20  ;;  %v431_v24 = vpop.f32.mrb[5].mxu1 }
 0x311   :  { %v347_v25 = vpop.f32.mrb[6].mxu1 }
 0x312   :  { %353 = vst.msk [vmem:[#allocation4 + $0x8] sm:$0xff] %vm71_vm0, %v351_v23  ;;  %v432_v26 = vpop.f32.mrb[7].mxu1 }
 0x315   :  { %v363_v27 = vld [vmem:[#allocation4] sm:$0xff] }
 0x319   :  { %v364_v30 = vld [vmem:[#allocation4 + $0x8] sm:$0xff] }
 0x359   :  { %v368_v28 = vpop.permute.xlu0 %367 }
 0x35a   :  { %v375_v29 = vmul.f32 %v368_v28, %v363_v27 }
 0x35c   :  { %377 = vst.msk [vmem:[#allocation11] sm:$0xff] %vm71_vm0, %v375_v29 }
 0x35d   :  { %v373_v31 = vpop.permute.xlu0 %372 }
 0x35e   :  { %v376_v32 = vmul.f32 %v373_v31, %v364_v30 }
 0x360   :  { %378 = vst.msk [vmem:[#allocation11 + $0x8] sm:$0xff] %vm71_vm0, %v376_v32 }
 0x361   :  { %534 = shalt.err (!%p531_p0)
}
 0x362   :  { %s535_s8 = scalar_lea.hbm %s691_s4, 256 }
 0x363   :  { %p536_p1 = scmp.ne.s32.totalorder %s691_s4, %s535_s8  ;;  %p539_p2 = scmp.lt.u32.totalorder %s535_s8, %s691_s4 }
 0x365   :  { %p541_p3 = pnand %p539_p2, %p536_p1 }
 0x367   :  { %544 = shalt.err (!%p541_p3)
}
 0x368   :  { %390 = dma.vmem_to_hbm [thread:$0]  %s385_s30, 256, %s691_s4, [#allocation7], %s553_s27, %s553_s27, %s554_s28  }
 0x369   :  { %549 = dma.done.wait [#allocation7], 256  }
 0x36a   :  { %550 = vsyncadd [#allocation7], 4294967040 }
 0x36b   :  { %394 = vsyncpa [#allocation6], 1 }
 0x36c   :  { %395 = vsyncpa [#allocation9], 1 }
 0x36d   :  { %396 = vsyncpa [#allocation7], 1 }

</bundles_post_ra>
